<compile_context>
chip_gen: v6e
topology: v6e:2x2x1
jax: 0.10.0
libtpu: 0.0.40
codegen_flags: <defaults>
</compile_context>

<pallas_src>
import functools
import math

import jax
import jax.numpy as jnp
import numpy as np
from jax.experimental import pallas as pl
from jax.experimental.pallas import tpu as pltpu


def _selfatt_kernel(fea_kv_ref, fea_q_ref, wq_ref, bq_ref, wkv_ref, bkv_ref,
                    wo_ref, bo_ref, h_ref, s_ref, *, heads, d_k, compute_dtype):
    """One grid step == (one batch element, one query tile).

    fea_kv_ref: (1, S, D)     full sequence (keys / values source)
    fea_q_ref : (1, tq, D)    query tile (also the residual input)
    wq_ref    : (H, D, d_k)       bq_ref : (H, 1, d_k)
    wkv_ref   : (H, D, 2*d_k)     bkv_ref: (H, 1, 2*d_k)   ([K | V] on last dim)
    wo_ref    : (H, d_k, D)       bo_ref : (1, D)
    h_ref     : (1, tq, D)    residual output
    s_ref     : (1, H, tq, S) attention probabilities
    """
    cdt = compute_dtype
    f32 = jnp.float32
    S = fea_kv_ref.shape[1]
    D = fea_kv_ref.shape[2]
    tq = fea_q_ref.shape[1]
    scale = 1.0 / math.sqrt(d_k)

    x_kv = fea_kv_ref[0]                                   # (S, D)  f32
    x_q = fea_q_ref[0]                                     # (tq, D) f32

    # Head-batched activations (broadcast once; reused by the fused projections).
    xb_kv = jnp.broadcast_to(x_kv.astype(cdt)[None], (heads, S, D))
    xb_q = jnp.broadcast_to(x_q.astype(cdt)[None], (heads, tq, D))

    # Fused K/V projection + Q projection: head-batched MXU matmuls,
    # f32 accumulation, f32 bias adds.
    kv = jnp.einsum("hsd,hdk->hsk", xb_kv, wkv_ref[...],
                    preferred_element_type=f32) + bkv_ref[...]       # (H, S, 2*d_k)
    qh = jnp.einsum("hsd,hdk->hsk", xb_q, wq_ref[...],
                    preferred_element_type=f32) + bq_ref[...]        # (H, tq, d_k)

    kh = kv[:, :, :d_k]                                              # (H, S, d_k)
    vh = kv[:, :, d_k:]                                              # (H, S, d_k)

    # Scaled dot-product attention; softmax entirely in f32.
    qh = qh * scale
    sc = jnp.einsum("hqd,hkd->hqk", qh.astype(cdt), kh.astype(cdt),
                    preferred_element_type=f32)                      # (H, tq, S)
    sc = sc - jnp.max(sc, axis=-1, keepdims=True)
    e = jnp.exp(sc)
    p = e * pl.reciprocal(jnp.sum(e, axis=-1, keepdims=True), approx=True)

    # Single store of the attention probabilities (no per-head partial stores).
    s_ref[0] = p.astype(s_ref.dtype)

    # Attention output; output projection summed over heads == concat @ Wo.
    ctx = jnp.einsum("hqk,hkd->hqd", p.astype(cdt), vh.astype(cdt),
                     preferred_element_type=f32)                     # (H, tq, d_k)
    out = jnp.einsum("hqd,hde->hqe", ctx.astype(cdt), wo_ref[...],
                     preferred_element_type=f32)                     # (H, tq, D)
    out = jnp.sum(out, axis=0) + bo_ref[...]                         # (tq, D)

    # Residual add in f32 (dropout == identity in eval mode).
    h_ref[0] = (x_q + out).astype(h_ref.dtype)


def self_att(fea, params, *, heads, q_tile=256, compute_dtype=jnp.bfloat16):
    """fea: (B, S, D) float32.  params: dict of (D,D) weights and (1,D) biases."""
    B, S, D = fea.shape
    assert D % heads == 0, "d_model must be divisible by heads"
    d_k = D // heads
    tq = min(q_tile, S)
    if S % tq != 0:
        tq = S
    T = S // tq
    f32 = jnp.float32

    # Host-side repacking: head-major weights, K/V fused along the last dim.
    def to_heads(w):                                 # (D, D) -> (H, D, d_k)
        return w.reshape(D, heads, d_k).transpose(1, 0, 2)

    wq_h = to_heads(params["wq"]).astype(compute_dtype)                  # (H, D, d_k)
    wkv_h = jnp.concatenate([to_heads(params["wk"]), to_heads(params["wv"])],
                            axis=-1).astype(compute_dtype)               # (H, D, 2*d_k)
    bq_h = params["bq"].reshape(heads, 1, d_k).astype(f32)               # (H, 1, d_k)
    bkv_h = jnp.concatenate([params["bk"].reshape(heads, 1, d_k),
                             params["bv"].reshape(heads, 1, d_k)],
                            axis=-1).astype(f32)                         # (H, 1, 2*d_k)
    wo_h = params["wo"].reshape(heads, d_k, D).astype(compute_dtype)     # (H, d_k, D)
    bo = params["bo"].astype(f32)                                        # (1, D)

    kernel = functools.partial(_selfatt_kernel, heads=heads, d_k=d_k,
                               compute_dtype=compute_dtype)

    def full3(shape):
        return pl.BlockSpec(shape, lambda b, t: (0, 0, 0))

    h_out, s_out = pl.pallas_call(
        kernel,
        out_shape=(
            jax.ShapeDtypeStruct((B, S, D), fea.dtype),
            jax.ShapeDtypeStruct((B, heads, S, S), jnp.float32),
        ),
        grid_spec=pltpu.PrefetchScalarGridSpec(
            num_scalar_prefetch=0,
            grid=(B, T),
            in_specs=[
                pl.BlockSpec((1, S, D), lambda b, t: (b, 0, 0)),     # fea (K/V)
                pl.BlockSpec((1, tq, D), lambda b, t: (b, t, 0)),    # fea (Q tile)
                full3((heads, D, d_k)),                              # Wq
                full3((heads, 1, d_k)),                              # bq
                full3((heads, D, 2 * d_k)),                          # Wkv
                full3((heads, 1, 2 * d_k)),                          # bkv
                full3((heads, d_k, D)),                              # Wo
                pl.BlockSpec((1, D), lambda b, t: (0, 0)),           # bo
            ],
            out_specs=[
                pl.BlockSpec((1, tq, D), lambda b, t: (b, t, 0)),
                pl.BlockSpec((1, heads, tq, S), lambda b, t: (b, 0, t, 0)),
            ],
        ),
        compiler_params=pltpu.CompilerParams(
            dimension_semantics=("parallel", "parallel"),
            vmem_limit_bytes=48 * 1024 * 1024,
        ),
    )(fea, fea, wq_h, bq_h, wkv_h, bkv_h, wo_h, bo)
    return h_out, s_out


def self_att_reference(fea, params, *, heads):
    """Pure-JAX f32 reference mirroring the PyTorch forward (dropout = identity)."""
    B, S, D = fea.shape
    d_k = D // heads
    q = fea @ params["wq"] + params["bq"]
    k = fea @ params["wk"] + params["bk"]
    v = fea @ params["wv"] + params["bv"]

    def split(t):  # (B, S, D) -> (B, H, S, d_k)
        return t.reshape(B, S, heads, d_k).transpose(0, 2, 1, 3)

    q, k, v = split(q), split(k), split(v)
    scores = jnp.einsum("bhsd,bhtd->bhst", q, k) / math.sqrt(d_k)
    scores = jax.nn.softmax(scores, axis=-1)
    out = jnp.einsum("bhst,bhtd->bhsd", scores, v)
    out = out.transpose(0, 2, 1, 3).reshape(B, S, D)
    out = out @ params["wo"] + params["bo"]
    h = fea + out          # h1.squeeze() is a no-op for these shapes
    return h, scores


def make_params(key, d_model):
    ks = jax.random.split(key, 8)
    bound = 1.0 / math.sqrt(d_model)
    u = lambda k, shape: jax.random.uniform(k, shape, jnp.float32, -bound, bound)
    return {
        "wq": u(ks[0], (d_model, d_model)), "bq": u(ks[1], (1, d_model)),
        "wk": u(ks[2], (d_model, d_model)), "bk": u(ks[3], (1, d_model)),
        "wv": u(ks[4], (d_model, d_model)), "bv": u(ks[5], (1, d_model)),
        "wo": u(ks[6], (d_model, d_model)), "bo": u(ks[7], (1, d_model)),
    }


if __name__ == "__main__":
    B, S, D, HEADS = 2, 8, 32, 4

    root = jax.random.PRNGKey(0)
    k_fea, k_par = jax.random.split(root)
    fea = jax.random.normal(k_fea, (B, S, D), jnp.float32)
    params = make_params(k_par, D)

    h_ref, s_ref_v = self_att_reference(fea, params, heads=HEADS)

    # Exact-precision path (f32 matmuls) — tight check.
    h32, s32 = self_att(fea, params, heads=HEADS, compute_dtype=jnp.float32)
    jax.block_until_ready((h32, s32))
    np.testing.assert_allclose(np.asarray(h32), np.asarray(h_ref), rtol=2e-3, atol=2e-3)
    np.testing.assert_allclose(np.asarray(s32), np.asarray(s_ref_v), rtol=2e-3, atol=2e-3)

    # Performance path (bf16 MXU inputs, f32 accumulation/softmax) — loose check.
    hbf, sbf = self_att(fea, params, heads=HEADS, compute_dtype=jnp.bfloat16)
    jax.block_until_ready((hbf, sbf))
    np.testing.assert_allclose(np.asarray(hbf), np.asarray(h_ref), rtol=3e-2, atol=3e-2)
    np.testing.assert_allclose(np.asarray(sbf), np.asarray(s_ref_v), rtol=3e-2, atol=3e-2)

    print("KERNEL_OK")
</pallas_src>

<mosaic_0001>
module attributes {stable_mosaic.version = 11 : i64} {
  func.func @_selfatt_kernel(%arg0: i32, %arg1: i32, %arg2: memref<1x8x32xf32, #tpu.memory_space<vmem>>, %arg3: memref<1x8x32xf32, #tpu.memory_space<vmem>>, %arg4: memref<4x32x8xf32, #tpu.memory_space<vmem>>, %arg5: memref<4x1x8xf32, #tpu.memory_space<vmem>>, %arg6: memref<4x32x16xf32, #tpu.memory_space<vmem>>, %arg7: memref<4x1x16xf32, #tpu.memory_space<vmem>>, %arg8: memref<4x8x32xf32, #tpu.memory_space<vmem>>, %arg9: memref<1x32xf32, #tpu.memory_space<vmem>>, %arg10: memref<1x8x32xf32, #tpu.memory_space<vmem>>, %arg11: memref<1x4x8x8xf32, #tpu.memory_space<vmem>>) attributes {dimension_semantics = [#tpu.dimension_semantics<parallel>, #tpu.dimension_semantics<parallel>], iteration_bounds = array<i64: 2, 1>, scalar_prefetch = 0 : i64, scratch_operands = 0 : i64, tpu.core_type = #tpu.core_type<tc>, window_params = [{transform_indices = @transform_0, window_bounds = array<i64: 1, 8, 32>}, {transform_indices = @transform_1, window_bounds = array<i64: 1, 8, 32>}, {pipeline_mode = #tpu.pipeline_mode<synchronous>, transform_indices = @transform_2, window_bounds = array<i64: 4, 32, 8>}, {pipeline_mode = #tpu.pipeline_mode<synchronous>, transform_indices = @transform_3, window_bounds = array<i64: 4, 1, 8>}, {pipeline_mode = #tpu.pipeline_mode<synchronous>, transform_indices = @transform_4, window_bounds = array<i64: 4, 32, 16>}, {pipeline_mode = #tpu.pipeline_mode<synchronous>, transform_indices = @transform_5, window_bounds = array<i64: 4, 1, 16>}, {pipeline_mode = #tpu.pipeline_mode<synchronous>, transform_indices = @transform_6, window_bounds = array<i64: 4, 8, 32>}, {pipeline_mode = #tpu.pipeline_mode<synchronous>, transform_indices = @transform_7, window_bounds = array<i64: 1, 32>}, {transform_indices = @transform_8, window_bounds = array<i64: 1, 8, 32>}, {transform_indices = @transform_9, window_bounds = array<i64: 1, 4, 8, 8>}]} {
    %c0 = arith.constant 0 : index
    %c0_0 = arith.constant 0 : index
    %c0_1 = arith.constant 0 : index
    %0 = vector.load %arg2[%c0, %c0_0, %c0_1] : memref<1x8x32xf32, #tpu.memory_space<vmem>>, vector<1x8x32xf32>
    %1 = vector.shape_cast %0 : vector<1x8x32xf32> to vector<8x32xf32>
    %c0_2 = arith.constant 0 : index
    %c0_3 = arith.constant 0 : index
    %c0_4 = arith.constant 0 : index
    %2 = vector.load %arg3[%c0_2, %c0_3, %c0_4] : memref<1x8x32xf32, #tpu.memory_space<vmem>>, vector<1x8x32xf32>
    %3 = vector.shape_cast %2 : vector<1x8x32xf32> to vector<8x32xf32>
    %4 = vector.shape_cast %1 : vector<8x32xf32> to vector<1x8x32xf32>
    %5 = vector.shape_cast %4 : vector<1x8x32xf32> to vector<1x8x32xf32>
    %6 = vector.broadcast %5 : vector<1x8x32xf32> to vector<4x8x32xf32>
    %7 = vector.shape_cast %3 : vector<8x32xf32> to vector<1x8x32xf32>
    %8 = vector.shape_cast %7 : vector<1x8x32xf32> to vector<1x8x32xf32>
    %9 = vector.broadcast %8 : vector<1x8x32xf32> to vector<4x8x32xf32>
    %c0_5 = arith.constant 0 : index
    %c0_6 = arith.constant 0 : index
    %c0_7 = arith.constant 0 : index
    %10 = vector.load %arg6[%c0_5, %c0_6, %c0_7] : memref<4x32x16xf32, #tpu.memory_space<vmem>>, vector<4x32x16xf32>
    "tpu.trace_start"() <{level = 10 : i32, message = "hsd,hdk->hsk"}> : () -> ()
    %cst = arith.constant dense<0.000000e+00> : vector<4x8x16xf32>
    %11 = tpu.matmul %6, %10, %cst {dimension_numbers = #tpu.dot_dimension_numbers<[2], [1], [1], [2], [0, 0, 0, 1, 1, 2], [0], [0]>} : vector<4x8x32xf32>, vector<4x32x16xf32>, vector<4x8x16xf32> -> vector<4x8x16xf32>
    "tpu.trace_stop"() : () -> ()
    %c0_8 = arith.constant 0 : index
    %c0_9 = arith.constant 0 : index
    %c0_10 = arith.constant 0 : index
    %12 = vector.load %arg7[%c0_8, %c0_9, %c0_10] : memref<4x1x16xf32, #tpu.memory_space<vmem>>, vector<4x1x16xf32>
    %13 = vector.broadcast %12 : vector<4x1x16xf32> to vector<4x8x16xf32>
    %14 = arith.addf %11, %13 : vector<4x8x16xf32>
    %c0_11 = arith.constant 0 : index
    %c0_12 = arith.constant 0 : index
    %c0_13 = arith.constant 0 : index
    %15 = vector.load %arg4[%c0_11, %c0_12, %c0_13] : memref<4x32x8xf32, #tpu.memory_space<vmem>>, vector<4x32x8xf32>
    "tpu.trace_start"() <{level = 10 : i32, message = "hsd,hdk->hsk"}> : () -> ()
    %cst_14 = arith.constant dense<0.000000e+00> : vector<4x8x8xf32>
    %16 = tpu.matmul %9, %15, %cst_14 {dimension_numbers = #tpu.dot_dimension_numbers<[2], [1], [1], [2], [0, 0, 0, 1, 1, 2], [0], [0]>} : vector<4x8x32xf32>, vector<4x32x8xf32>, vector<4x8x8xf32> -> vector<4x8x8xf32>
    "tpu.trace_stop"() : () -> ()
    %c0_15 = arith.constant 0 : index
    %c0_16 = arith.constant 0 : index
    %c0_17 = arith.constant 0 : index
    %17 = vector.load %arg5[%c0_15, %c0_16, %c0_17] : memref<4x1x8xf32, #tpu.memory_space<vmem>>, vector<4x1x8xf32>
    %18 = vector.broadcast %17 : vector<4x1x8xf32> to vector<4x8x8xf32>
    %19 = arith.addf %16, %18 : vector<4x8x8xf32>
    %20 = vector.extract_strided_slice %14 {offsets = [0, 0, 0], sizes = [4, 8, 8], strides = [1, 1, 1]} : vector<4x8x16xf32> to vector<4x8x8xf32>
    %21 = vector.extract_strided_slice %14 {offsets = [0, 0, 8], sizes = [4, 8, 8], strides = [1, 1, 1]} : vector<4x8x16xf32> to vector<4x8x8xf32>
    %cst_18 = arith.constant 0.353553385 : f32
    %22 = vector.broadcast %cst_18 : f32 to vector<4x8x8xf32>
    %23 = arith.mulf %19, %22 : vector<4x8x8xf32>
    "tpu.trace_start"() <{level = 10 : i32, message = "hqd,hkd->hqk"}> : () -> ()
    %cst_19 = arith.constant dense<0.000000e+00> : vector<4x8x8xf32>
    %24 = tpu.matmul %23, %20, %cst_19 {dimension_numbers = #tpu.dot_dimension_numbers<[2], [2], [1], [1], [0, 0, 0, 1, 1, 1], [0], [0]>} : vector<4x8x8xf32>, vector<4x8x8xf32>, vector<4x8x8xf32> -> vector<4x8x8xf32>
    "tpu.trace_stop"() : () -> ()
    %cst_20 = arith.constant dense<0xFF800000> : vector<4x8xf32>
    %25 = vector.multi_reduction <maximumf>, %24, %cst_20 [2] : vector<4x8x8xf32> to vector<4x8xf32>
    %26 = vector.shape_cast %25 : vector<4x8xf32> to vector<4x8x1xf32>
    %27 = vector.broadcast %26 : vector<4x8x1xf32> to vector<4x8x8xf32>
    %28 = arith.subf %24, %27 : vector<4x8x8xf32>
    %29 = math.exp %28 : vector<4x8x8xf32>
    %cst_21 = arith.constant dense<0.000000e+00> : vector<4x8xf32>
    %30 = vector.multi_reduction <add>, %29, %cst_21 [2] : vector<4x8x8xf32> to vector<4x8xf32>
    %31 = vector.shape_cast %30 : vector<4x8xf32> to vector<4x8x1xf32>
    %32 = tpu.reciprocal %31 {approx = true} : vector<4x8x1xf32> -> vector<4x8x1xf32>
    %33 = vector.broadcast %32 : vector<4x8x1xf32> to vector<4x8x8xf32>
    %34 = arith.mulf %29, %33 : vector<4x8x8xf32>
    %c0_22 = arith.constant 0 : index
    %c0_23 = arith.constant 0 : index
    %c0_24 = arith.constant 0 : index
    %c0_25 = arith.constant 0 : index
    %35 = vector.load %arg11[%c0_22, %c0_23, %c0_24, %c0_25] : memref<1x4x8x8xf32, #tpu.memory_space<vmem>>, vector<1x4x8x8xf32>
    %36 = vector.shape_cast %35 : vector<1x4x8x8xf32> to vector<4x8x8xf32>
    %37 = vector.shape_cast %34 : vector<4x8x8xf32> to vector<1x4x8x8xf32>
    tpu.vector_store %arg11[%c0_22, %c0_23, %c0_24, %c0_25], %37 {strides = array<i32>} : memref<1x4x8x8xf32, #tpu.memory_space<vmem>>, vector<1x4x8x8xf32>,
    "tpu.trace_start"() <{level = 10 : i32, message = "hqk,hkd->hqd"}> : () -> ()
    %cst_26 = arith.constant dense<0.000000e+00> : vector<4x8x8xf32>
    %38 = tpu.matmul %34, %21, %cst_26 {dimension_numbers = #tpu.dot_dimension_numbers<[2], [1], [1], [2], [0, 0, 0, 1, 1, 2], [0], [0]>} : vector<4x8x8xf32>, vector<4x8x8xf32>, vector<4x8x8xf32> -> vector<4x8x8xf32>
    "tpu.trace_stop"() : () -> ()
    %c0_27 = arith.constant 0 : index
    %c0_28 = arith.constant 0 : index
    %c0_29 = arith.constant 0 : index
    %39 = vector.load %arg8[%c0_27, %c0_28, %c0_29] : memref<4x8x32xf32, #tpu.memory_space<vmem>>, vector<4x8x32xf32>
    "tpu.trace_start"() <{level = 10 : i32, message = "hqd,hde->hqe"}> : () -> ()
    %cst_30 = arith.constant dense<0.000000e+00> : vector<4x8x32xf32>
    %40 = tpu.matmul %38, %39, %cst_30 {dimension_numbers = #tpu.dot_dimension_numbers<[2], [1], [1], [2], [0, 0, 0, 1, 1, 2], [0], [0]>} : vector<4x8x8xf32>, vector<4x8x32xf32>, vector<4x8x32xf32> -> vector<4x8x32xf32>
    "tpu.trace_stop"() : () -> ()
    %cst_31 = arith.constant dense<0.000000e+00> : vector<8x32xf32>
    %41 = vector.multi_reduction <add>, %40, %cst_31 [0] : vector<4x8x32xf32> to vector<8x32xf32>
    %c0_32 = arith.constant 0 : index
    %c0_33 = arith.constant 0 : index
    %42 = vector.load %arg9[%c0_32, %c0_33] : memref<1x32xf32, #tpu.memory_space<vmem>>, vector<1x32xf32>
    %43 = vector.broadcast %42 : vector<1x32xf32> to vector<8x32xf32>
    %44 = arith.addf %41, %43 : vector<8x32xf32>
    %45 = arith.addf %3, %44 : vector<8x32xf32>
    %c0_34 = arith.constant 0 : index
    %c0_35 = arith.constant 0 : index
    %c0_36 = arith.constant 0 : index
    %46 = vector.load %arg10[%c0_34, %c0_35, %c0_36] : memref<1x8x32xf32, #tpu.memory_space<vmem>>, vector<1x8x32xf32>
    %47 = vector.shape_cast %46 : vector<1x8x32xf32> to vector<8x32xf32>
    %48 = vector.shape_cast %45 : vector<8x32xf32> to vector<1x8x32xf32>
    tpu.vector_store %arg10[%c0_34, %c0_35, %c0_36], %48 {strides = array<i32>} : memref<1x8x32xf32, #tpu.memory_space<vmem>>, vector<1x8x32xf32>,
    return
  }
  func.func @transform_0(%arg0: i32, %arg1: i32) -> (i32, i32, i32) {
    %c0_i32 = arith.constant 0 : i32
    %c0_i32_0 = arith.constant 0 : i32
    %c0_i32_1 = arith.constant 0 : i32
    return %arg0, %c0_i32, %c0_i32_0 : i32, i32, i32
  }
  func.func @transform_1(%arg0: i32, %arg1: i32) -> (i32, i32, i32) {
    %c0_i32 = arith.constant 0 : i32
    %c0_i32_0 = arith.constant 0 : i32
    return %arg0, %arg1, %c0_i32 : i32, i32, i32
  }
  func.func @transform_2(%arg0: i32, %arg1: i32) -> (i32, i32, i32) {
    %c0_i32 = arith.constant 0 : i32
    %c0_i32_0 = arith.constant 0 : i32
    %c0_i32_1 = arith.constant 0 : i32
    %c0_i32_2 = arith.constant 0 : i32
    return %c0_i32, %c0_i32_0, %c0_i32_1 : i32, i32, i32
  }
  func.func @transform_3(%arg0: i32, %arg1: i32) -> (i32, i32, i32) {
    %c0_i32 = arith.constant 0 : i32
    %c0_i32_0 = arith.constant 0 : i32
    %c0_i32_1 = arith.constant 0 : i32
    %c0_i32_2 = arith.constant 0 : i32
    return %c0_i32, %c0_i32_0, %c0_i32_1 : i32, i32, i32
  }
  func.func @transform_4(%arg0: i32, %arg1: i32) -> (i32, i32, i32) {
    %c0_i32 = arith.constant 0 : i32
    %c0_i32_0 = arith.constant 0 : i32
    %c0_i32_1 = arith.constant 0 : i32
    %c0_i32_2 = arith.constant 0 : i32
    return %c0_i32, %c0_i32_0, %c0_i32_1 : i32, i32, i32
  }
  func.func @transform_5(%arg0: i32, %arg1: i32) -> (i32, i32, i32) {
    %c0_i32 = arith.constant 0 : i32
    %c0_i32_0 = arith.constant 0 : i32
    %c0_i32_1 = arith.constant 0 : i32
    %c0_i32_2 = arith.constant 0 : i32
    return %c0_i32, %c0_i32_0, %c0_i32_1 : i32, i32, i32
  }
  func.func @transform_6(%arg0: i32, %arg1: i32) -> (i32, i32, i32) {
    %c0_i32 = arith.constant 0 : i32
    %c0_i32_0 = arith.constant 0 : i32
    %c0_i32_1 = arith.constant 0 : i32
    %c0_i32_2 = arith.constant 0 : i32
    return %c0_i32, %c0_i32_0, %c0_i32_1 : i32, i32, i32
  }
  func.func @transform_7(%arg0: i32, %arg1: i32) -> (i32, i32) {
    %c0_i32 = arith.constant 0 : i32
    %c0_i32_0 = arith.constant 0 : i32
    %c0_i32_1 = arith.constant 0 : i32
    return %c0_i32, %c0_i32_0 : i32, i32
  }
  func.func @transform_8(%arg0: i32, %arg1: i32) -> (i32, i32, i32) {
    %c0_i32 = arith.constant 0 : i32
    %c0_i32_0 = arith.constant 0 : i32
    return %arg0, %arg1, %c0_i32 : i32, i32, i32
  }
  func.func @transform_9(%arg0: i32, %arg1: i32) -> (i32, i32, i32, i32) {
    %c0_i32 = arith.constant 0 : i32
    %c0_i32_0 = arith.constant 0 : i32
    %c0_i32_1 = arith.constant 0 : i32
    return %arg0, %c0_i32, %arg1, %c0_i32_0 : i32, i32, i32, i32
  }
}

</mosaic_0001>

<bundles_post_ra>
// kernel: tpu_custom_call.1
= control target key start
LH: loop header
LB: loop body
LE: loop exit
PB: predicated region body
PF: predicated region fallthrough
CT: control target
= control target key end

     0   :  { %s3107_s0 = inlined_call_operand.vmem [shape: f32[2,8,32], index: 0, kind: input, shape index: {}]   ;;  %s3108_s1 = inlined_call_operand.vmem [shape: f32[2,8,32], index: 1, kind: input, shape index: {}]   ;;  %s3109_s2 = inlined_call_operand.vmem [shape: f32[4,32,8], index: 2, kind: input, shape index: {}]   ;;  %s3110_s3 = inlined_call_operand.vmem [shape: f32[4,1,8], index: 3, kind: input, shape index: {}]   ;;  %s3111_s4 = inlined_call_operand.vmem [shape: f32[4,32,16], index: 4, kind: input, shape index: {}]   ;;  %s3112_s5 = inlined_call_operand.vmem [shape: f32[4,1,16], index: 5, kind: input, shape index: {}]   ;;  %s3113_s6 = inlined_call_operand.vmem [shape: f32[4,8,32], index: 6, kind: input, shape index: {}]   ;;  %s3114_s7 = inlined_call_operand.vmem [shape: f32[1,32], index: 7, kind: input, shape index: {}]   ;;  %s3115_s8 = inlined_call_operand.hbm [shape: f32[2,8,32], index: 8, kind: output, shape index: {0}]   ;;  %s3116_s9 = inlined_call_operand.hbm [shape: f32[2,4,8,8], index: 9, kind: output, shape index: {1}]  }
   0x1   :  { %3117 = sst [smem:[#allocation8_spill]] %s3107_s0 }
   0x2   :  { %15 = vsyncpa [#allocation3], 0 }
   0x3   :  { %17 = vsyncpa [#allocation3 + $0x1], 0 }
   0x4   :  { %18 = vsyncpa [#allocation5], 0 }
   0x5   :  { %20 = vsyncpa [#allocation5 + $0x1], 0  ;;  %s2676_s30 = smov 0   ;;  %s2678_s10 = smov 0  }
   0x6   :  { %s2680_s11 = smov 0   ;;  %s2682_s12 = smov 0  }
   0x7   :  { %s2684_s13 = smov 0   ;;  %s2686_s14 = smov 0  }
   0x8 LB: > { %s2168_s15 = sadd.s32 4294967295, %s2617_s14   ;;  %s2169_s16 = sadd.s32 4294967294, %s2617_s14   ;;  %s2617_s14 = sphi %s2686_s14, %s26_s14   ;;  %s2613_s13 = sphi %s2684_s13, %s3126_s13   ;;  %s2609_s12 = sphi %s2682_s12, %s3125_s12   ;;  %s2605_s11 = sphi %s2680_s11, %s3124_s11   ;;  %s2601_s10 = sphi %s2678_s10, %s3123_s10   ;;  %s2597_s30 = sphi %s2676_s30, %s3122_s30  }
   0x9   : > { %s38_s17 = sadd.s32 1, %s2613_s13  ;;  %s227_s18 = sadd.s32 1, %s2605_s11 }
   0xa   : > { %p40_p0 = scmp.ge.s32.totalorder %s38_s17, 2  ;;  %p237_p1 = scmp.ne.s32.totalorder %s2605_s11, %s2601_s10 }
   0xb   : > { %p238_p2 = scmp.eq.s32.totalorder %s2168_s15, 1  ;;  %p243_p3 = scmp.ne.s32.totalorder %s2601_s10, %s2597_s30 }
   0xc   : > { %s3128_s17 = smov (%p40_p0, %s38_s17), 0  ;;  %p244_p5 = scmp.eq.s32.totalorder %s2169_s16, 1 }
   0xd   : > { %p2716_p4 = por %p238_p2, %p237_p1  ;;  %s222_s20 = ssub.s32 %s2613_s13, %s3128_s17 }
   0xe   : > { %p2172_p6 = scmp.ge.s32.totalorder %s2617_s14, 1  ;;  %p225_p7 = scmp.eq.s32.totalorder %s222_s20, 0 }
   0xf   : > { %p2723_p8 = por %p244_p5, %p243_p3  ;;  %p325_p9 = scmp.lt.s32.totalorder %s2617_s14, 3 }
  0x10   : > { %s2729_s22 = scalar_select %p225_p7, %s2605_s11, %s227_s18  }
  0x11   : > { %p326_p10 = pnand %p2172_p6, %p325_p9 }
  0x12   : > { %p372_p11 = scmp.lt.s32.totalorder (!%p326_p10), %s2609_s12, 1  ;;  %s3120_s0 = sld [smem:[#allocation8_spill]] (!%p326_p10) }
  0x13   : > { %329 = sbr.rel (%p326_p10) target bundleno = 1223 (0x4c7), region = 52  ;;  %s2621_s18 = smov (!%p326_p10), 120  }
  0x14   : > { %s2217_s23 = sshll.u32 (!%p326_p10), %s2609_s12, 9 }
  0x18   : > { %v388_v0 = vld [vmem:[%s3111_s4 + $0x18] sm:$0xff]  ;;  %v2619_v2 = vmov 0.0   ;;  %v387_v3 = vld [vmem:[%s3111_s4 + $0x10] sm:$0xff]  ;;  %s2747_s16 = scalar_select %p372_p11, %s2609_s12, 1  ;;  %v386_v5 = vld [vmem:[%s3111_s4 + $0x8] sm:$0xff]  ;;  %vm429_vm0 = vcmask 261120  }
  0x19   : > { %v392_v1 = vld [vmem:[%s3111_s4 + $0x38] sm:$0xff]  ;;  %2282 = vmatprep.subr.mxu0 %v2619_v2  ;;  %2293 = vmatprep.subr.mxu1 %v2619_v2  ;;  %v391_v4 = vld [vmem:[%s3111_s4 + $0x30] sm:$0xff]  ;;  %v390_v6 = vld [vmem:[%s3111_s4 + $0x28] sm:$0xff]  ;;  %vm2620_vm1 = vmmov 0   ;;  %vm1044_vm2 = vcmask 64512  }
  0x1a   : > { %2283 = vmatpush3.msra.mxu0 %v388_v0  ;;  %2294 = vmatpush3.msra.mxu1 %v392_v1  ;;  %s2175_s25 = sshll.u32 %s2747_s16, 3  ;;  %v385_v7 = vld [vmem:[%s3111_s4] sm:$0xff]  ;;  %v396_v10 = vld [vmem:[%s3111_s4 + $0x58] sm:$0xff]  ;;  %v395_v12 = vld [vmem:[%s3111_s4 + $0x50] sm:$0xff]  ;;  %s2975_s16 = sand.u32 1, %s2601_s10  }
  0x1b   : > { %2284 = vmatprep.subr.mxu0 %v2619_v2  ;;  %2295 = vmatprep.subr.mxu1 %v2619_v2  ;;  %s375_s15 = scalar_lea.vmem %s3120_s0, %s2175_s25  ;;  %v389_v8 = vld [vmem:[%s3111_s4 + $0x20] sm:$0xff]  ;;  %v400_v11 = vld [vmem:[%s3111_s4 + $0x78] sm:$0xff]  ;;  %v399_v13 = vld [vmem:[%s3111_s4 + $0x70] sm:$0xff]  ;;  %s382_s27 = scalar_lea.vmem %s3108_s1, %s2175_s25 }
  0x1c   : > { %2285 = vmatpush3.msra.mxu0 %v387_v3  ;;  %2296 = vmatpush3.msra.mxu1 %v391_v4  ;;  %v383_v9 = vld [vmem:[%s375_s15] sm:$0xff]  ;;  %v394_v14 = vld [vmem:[%s3111_s4 + $0x48] sm:$0xff]  ;;  %v716_v18 = vld [vmem:[%s3109_s2 + $0x18] sm:$0xff]  ;;  %s2174_s25 = sshll.u32 %s2975_s16, 5  ;;  %s2622_s15 = smov [#allocation4]  }
  0x1d   : > { %2286 = vmatprep.subr.mxu0 %v2619_v2  ;;  %2297 = vmatprep.subr.mxu1 %v2619_v2  ;;  %v398_v15 = vld [vmem:[%s3111_s4 + $0x68] sm:$0xff]  ;;  %v393_v16 = vld [vmem:[%s3111_s4 + $0x40] sm:$0xff]  ;;  %v720_v19 = vld [vmem:[%s3109_s2 + $0x38] sm:$0xff]  ;;  %s2981_s20 = scalar_lea.vmem [#allocation4], %s2174_s25 }
  0x1e   : > { %2287 = vmatpush3.msra.mxu0 %v386_v5  ;;  %2298 = vmatpush3.msra.mxu1 %v390_v6  ;;  %v397_v17 = vld [vmem:[%s3111_s4 + $0x60] sm:$0xff]  ;;  %v715_v20 = vld [vmem:[%s3109_s2 + $0x10] sm:$0xff]  ;;  %v714_v22 = vld [vmem:[%s3109_s2 + $0x8] sm:$0xff]  ;;  %s2048_s25 = sshll.u32 %s2981_s20, 4  ;;  %s3028_s25 = int_to_ptr.vmem [resolvable:$true] %s2048_s25 }
  0x1f   : > { %2288 = vmatprep.subr.mxu0 %v2619_v2  ;;  %2299 = vmatprep.subr.mxu1 %v2619_v2  ;;  %v719_v21 = vld [vmem:[%s3109_s2 + $0x30] sm:$0xff]  ;;  %v718_v23 = vld [vmem:[%s3109_s2 + $0x28] sm:$0xff]  ;;  %v713_v24 = vld [vmem:[%s3109_s2] sm:$0xff]  ;;  %s2511_s29 = scalar_lea.vmem %s3028_s25, 512 }
  0x20   : > { %2289 = vmatpush3.msra.mxu0 %v385_v7  ;;  %2290 = vmatprep.mubr.msk.f32.mxu0 %vm2620_vm1, %v2619_v2  ;;  %v717_v25 = vld [vmem:[%s3109_s2 + $0x20] sm:$0xff]  ;;  %v724_v27 = vld [vmem:[%s3109_s2 + $0x58] sm:$0xff]  ;;  %v723_v29 = vld [vmem:[%s3109_s2 + $0x50] sm:$0xff]  ;;  %p2512_p12 = scmp.ne.s32.totalorder %s3028_s25, %s2511_s29 }
  0x21   : > { %2300 = vmatpush3.msra.mxu1 %v389_v8  ;;  %2291 = vmatmul.mubr.msk.f32.vlgmr.msra.gmra.mxu0 %vm429_vm0, %v383_v9  ;;  %v2854_v26 = vld [vmem:[%s382_s27] sm:$0xff]  ;;  %v728_v28 = vld [vmem:[%s3109_s2 + $0x78] sm:$0xff]  ;;  %v727_v30 = vld [vmem:[%s3109_s2 + $0x70] sm:$0xff]  ;;  %s3033_s27 = scalar_lea.hbm %s3116_s9, %s2217_s23 }
  0x22   : > { %2301 = vmatprep.mubr.msk.f32.mxu1 %vm2620_vm1, %v2619_v2  ;;  %2304 = vmatprep.subr.mxu0 %v2619_v2  ;;  %v722_v31 = vld [vmem:[%s3109_s2 + $0x48] sm:$0xff]  ;;  %v721_v33 = vld [vmem:[%s3109_s2 + $0x40] sm:$0xff]  ;;  %p2513_p13 = pnand %p2512_p12, %p2716_p4 }
  0x23   : > { %2315 = vmatprep.subr.mxu1 %v2619_v2  ;;  %2302 = vmatmul.mubr.msk.f32.vlgmr.msra.gmra.mxu1 %vm429_vm0, %v383_v9  ;;  %v726_v32 = vld [vmem:[%s3109_s2 + $0x68] sm:$0xff]  ;;  %v725_v34 = vld [vmem:[%s3109_s2 + $0x60] sm:$0xff] }
  0x24   : > { %2305 = vmatpush3.msra.mxu0 %v396_v10  ;;  %2316 = vmatpush3.msra.mxu1 %v400_v11  ;;  %v2177_v35 = vld [vmem:[%s3112_s5] ss:$0 sm:$0xff]  ;;  %v2178_v37 = vld [vmem:[%s3112_s5 + $0x1] ss:$0 sm:$0xff]  ;;  %v2179_v51 = vld [vmem:[%s3112_s5 + $0x2] ss:$0 sm:$0xff]  ;;  %p2514_p0 = pneg %p2513_p13 }
  0x25   : > { %2306 = vmatprep.subr.mxu0 %v2619_v2  ;;  %2317 = vmatprep.subr.mxu1 %v2619_v2  ;;  %v2185_v47 = vld [vmem:[%s3110_s3] ss:$0 sm:$0xff]  ;;  %v2186_v48 = vld [vmem:[%s3110_s3 + $0x1] ss:$0 sm:$0xff]  ;;  %v2180_v52 = vld [vmem:[%s3112_s5 + $0x3] ss:$0 sm:$0xff] }
  0x26   : > { %2307 = vmatpush3.msra.mxu0 %v395_v12  ;;  %2318 = vmatpush3.msra.mxu1 %v399_v13  ;;  %v2187_v61 = vld [vmem:[%s3110_s3 + $0x2] ss:$0 sm:$0xff]  ;;  %v2188_v63 = vld [vmem:[%s3110_s3 + $0x3] ss:$0 sm:$0xff] }
  0x27   : > { %2308 = vmatprep.subr.mxu0 %v2619_v2  ;;  %2319 = vmatprep.subr.mxu1 %v2619_v2 }
  0x28   : > { %2309 = vmatpush3.msra.mxu0 %v394_v14  ;;  %2320 = vmatpush3.msra.mxu1 %v398_v15 }
  0x29   : > { %2310 = vmatprep.subr.mxu0 %v2619_v2  ;;  %2321 = vmatprep.subr.mxu1 %v2619_v2 }
  0x2a   : > { %2311 = vmatpush3.msra.mxu0 %v393_v16  ;;  %2312 = vmatprep.mubr.msk.f32.mxu0 %vm2620_vm1, %v2619_v2 }
  0x2b   : > { %2322 = vmatpush3.msra.mxu1 %v397_v17  ;;  %2313 = vmatmul.mubr.msk.f32.vlgmr.msra.gmra.mxu0 %vm429_vm0, %v383_v9 }
  0x2c   : > { %2323 = vmatprep.mubr.msk.f32.mxu1 %vm2620_vm1, %v2619_v2  ;;  %2326 = vmatprep.subr.mxu0 %v2619_v2 }
  0x2d   : > { %2337 = vmatprep.subr.mxu1 %v2619_v2  ;;  %2324 = vmatmul.mubr.msk.f32.vlgmr.msra.gmra.mxu1 %vm429_vm0, %v383_v9 }
  0x2e   : > { %2327 = vmatpush3.msra.mxu0 %v716_v18  ;;  %2338 = vmatpush3.msra.mxu1 %v720_v19 }
  0x2f   : > { %2328 = vmatprep.subr.mxu0 %v2619_v2  ;;  %2339 = vmatprep.subr.mxu1 %v2619_v2 }
  0x30   : > { %2329 = vmatpush3.msra.mxu0 %v715_v20  ;;  %2340 = vmatpush3.msra.mxu1 %v719_v21 }
  0x31   : > { %2330 = vmatprep.subr.mxu0 %v2619_v2  ;;  %2341 = vmatprep.subr.mxu1 %v2619_v2 }
  0x32   : > { %2331 = vmatpush3.msra.mxu0 %v714_v22  ;;  %2342 = vmatpush3.msra.mxu1 %v718_v23 }
  0x33   : > { %2332 = vmatprep.subr.mxu0 %v2619_v2  ;;  %2343 = vmatprep.subr.mxu1 %v2619_v2 }
  0x34   : > { %2333 = vmatpush3.msra.mxu0 %v713_v24  ;;  %2334 = vmatprep.mubr.msk.f32.mxu0 %vm2620_vm1, %v2619_v2 }
  0x35   : > { %2344 = vmatpush3.msra.mxu1 %v717_v25  ;;  %2345 = vmatprep.mubr.msk.f32.mxu1 %vm2620_vm1, %v2619_v2 }
  0x36   : > { %2335 = vmatmul.mubr.msk.f32.vlgmr.msra.gmra.mxu0 %vm429_vm0, %v2854_v26  ;;  %2346 = vmatmul.mubr.msk.f32.vlgmr.msra.gmra.mxu1 %vm429_vm0, %v2854_v26 }
  0x37   : > { %2348 = vmatprep.subr.mxu0 %v2619_v2  ;;  %2359 = vmatprep.subr.mxu1 %v2619_v2 }
  0x38   : > { %2349 = vmatpush3.msra.mxu0 %v724_v27  ;;  %2360 = vmatpush3.msra.mxu1 %v728_v28 }
  0x39   : > { %2350 = vmatprep.subr.mxu0 %v2619_v2  ;;  %2361 = vmatprep.subr.mxu1 %v2619_v2 }
  0x3a   : > { %2351 = vmatpush3.msra.mxu0 %v723_v29  ;;  %2356 = vmatprep.mubr.msk.f32.mxu0 %vm2620_vm1, %v2619_v2 }
  0x3b   : > { %2352 = vmatprep.subr.mxu0 %v2619_v2  ;;  %2362 = vmatpush3.msra.mxu1 %v727_v30 }
  0x3c   : > { %2353 = vmatpush3.msra.mxu0 %v722_v31  ;;  %2363 = vmatprep.subr.mxu1 %v2619_v2 }
  0x3d   : > { %2354 = vmatprep.subr.mxu0 %v2619_v2  ;;  %2364 = vmatpush3.msra.mxu1 %v726_v32 }
  0x3e   : > { %2355 = vmatpush3.msra.mxu0 %v721_v33  ;;  %2365 = vmatprep.subr.mxu1 %v2619_v2 }
  0x3f   : > { %2357 = vmatmul.mubr.msk.f32.vlgmr.msra.gmra.mxu0 %vm429_vm0, %v2854_v26  ;;  %2366 = vmatpush3.msra.mxu1 %v725_v34 }
  0x40   : > { %2367 = vmatprep.mubr.msk.f32.mxu1 %vm2620_vm1, %v2619_v2  ;;  %2370 = vmatprep.subr.mxu0 %v2619_v2 }
  0x41   : > { %2368 = vmatmul.mubr.msk.f32.vlgmr.msra.gmra.mxu1 %vm429_vm0, %v2854_v26  ;;  %2375 = vmatprep.subr.mxu1 %v2619_v2 }
  0x42   : > { %2372 = vmatprep.mubr.msk.f32.mxu0 %vm2620_vm1, %v2619_v2  ;;  %2377 = vmatprep.mubr.msk.f32.mxu1 %vm2620_vm1, %v2619_v2 }
  0xe1   : > { %v499_v36 = vpop.f32.mrf.mxu0 }
  0xe2   : > { %v2916_v38 = vadd.f32 %v2177_v35, %v499_v36 }
  0xe3   : > { %v2292_v39 = vpop.f32.mrf.mxu0  ;;  %v569_v40 = vpop.f32.mrf.mxu1 }
  0xe4   : > { %v2918_v41 = vadd.f32 %v2178_v37, %v569_v40  ;;  %2371 = vmatpush3.xpose.msk.msra.mxu0 %vm1044_vm2, %v2916_v38 }
  0xe5   : > { %v2303_v42 = vpop.f32.mrf.mxu1  ;;  %2380 = vmatprep.subr.mxu0 %v2619_v2 }
  0xe6   : > { %2376 = vmatpush3.xpose.msk.msra.mxu1 %vm1044_vm2, %v2918_v41 }
  0xe7   : > { %2385 = vmatprep.subr.mxu1 %v2619_v2 }
  0xeb   : > { %v639_v43 = vpop.f32.mrf.mxu0 }
  0xec   : > { %v640_v59 = vadd.f32 %v2179_v51, %v639_v43 }
  0xed   : > { %v2314_v44 = vpop.f32.mrf.mxu0  ;;  %v709_v45 = vpop.f32.mrf.mxu1 }
  0xee   : > { %v2938_v60 = vadd.f32 %v2180_v52, %v709_v45 }
  0xef   : > { %v2325_v46 = vpop.f32.mrf.mxu1 }
  0xf6   : > { %v826_v49 = vpop.f32.mrf.mxu0  ;;  %v896_v50 = vpop.f32.mrf.mxu1 }
  0xf7   : > { %v827_v53 = vadd.f32 %v2185_v47, %v826_v49  ;;  %v897_v54 = vadd.f32 %v2186_v48, %v896_v50 }
  0xf8   : > { %v2336_v55 = vpop.f32.mrf.mxu0  ;;  %v2347_v56 = vpop.f32.mrf.mxu1 }
  0xf9   : > { %v1040_v57 = vmul.f32 0.35355338, %v827_v53  ;;  %v1041_v58 = vmul.f32 0.35355338, %v897_v54 }
  0xfb   : > { %2373 = vmatmul.mubr.msk.f32.vlgmr.msra.gmra.mxu0 %vm1044_vm2, %v1040_v57  ;;  %2378 = vmatmul.mubr.msk.f32.vlgmr.msra.gmra.mxu1 %vm1044_vm2, %v1041_v58  ;;  %v1701_v57 = vld [vmem:[%s3113_s6] sm:$0xff]  ;;  %v1702_v58 = vld [vmem:[%s3113_s6 + $0x8] sm:$0xff] }
  0xfc   : > { %2381 = vmatpush3.xpose.msk.msra.mxu0 %vm1044_vm2, %v640_v59  ;;  %2386 = vmatpush3.xpose.msk.msra.mxu1 %vm1044_vm2, %v2938_v60 }
  0xfd   : > { %2382 = vmatprep.mubr.msk.f32.mxu0 %vm2620_vm1, %v2619_v2  ;;  %2387 = vmatprep.mubr.msk.f32.mxu1 %vm2620_vm1, %v2619_v2 }
  0xfe   : > { %2395 = vmatprep.subr.mxu1 %v2619_v2  ;;  %2390 = vmatprep.subr.mxu0 %v2619_v2 }
  0xff   : > { %v966_v62 = vpop.f32.mrf.mxu0 }
 0x100   : > { %v967_v0 = vadd.f32 %v2187_v61, %v966_v62  ;;  %v1704_v62 = vld [vmem:[%s3113_s6 + $0x18] sm:$0xff] }
 0x101   : > { %v1036_v1 = vpop.f32.mrf.mxu1  ;;  %v2358_v3 = vpop.f32.mrf.mxu0 }
 0x102   : > { %v1042_v4 = vmul.f32 0.35355338, %v967_v0  ;;  %v1037_v5 = vadd.f32 %v2188_v63, %v1036_v1 }
 0x103   : > { %v2369_v6 = vpop.f32.mrf.mxu1 }
 0x104   : > { %v1043_v7 = vmul.f32 0.35355338, %v1037_v5  ;;  %2383 = vmatmul.mubr.msk.f32.vlgmr.msra.gmra.mxu0 %vm1044_vm2, %v1042_v4 }
 0x105   : > { %2392 = vmatprep.mubr.msk.f32.mxu0 %vm2620_vm1, %v2619_v2 }
 0x106   : > { %2388 = vmatmul.mubr.msk.f32.vlgmr.msra.gmra.mxu1 %vm1044_vm2, %v1043_v7 }
 0x107   : > { %2397 = vmatprep.mubr.msk.f32.mxu1 %vm2620_vm1, %v2619_v2 }
 0x1bb   : > { %v1117_v8 = vpop.f32.mrf.mxu0  ;;  %v1193_v9 = vpop.f32.mrf.mxu1 }
 0x1bc   : > { %v1349_v10 = vsel %vm1044_vm2, %v1117_v8, -inf  ;;  %v1352_v13 = vsel %vm1044_vm2, %v1193_v9, -inf }
 0x1bd   : > { %1350 = vmax.xlane.f32.xlu0 %v1349_v10  ;;  %v2374_v11 = vpop.f32.mrf.mxu0  ;;  %v2379_v12 = vpop.f32.mrf.mxu1 }
 0x1c1   : > { %1353 = vmax.xlane.f32.xlu0 %v1352_v13 }
 0x1c4   : > { %v1269_v14 = vpop.f32.mrf.mxu0 }
 0x1c5   : > { %v1355_v15 = vsel %vm1044_vm2, %v1269_v14, -inf }
 0x1c6   : > { %1356 = vmax.xlane.f32.xlu1 %v1355_v15  ;;  %v1345_v16 = vpop.f32.mrf.mxu1  ;;  %v2384_v17 = vpop.f32.mrf.mxu0 }
 0x1c7   : > { %v1358_v18 = vsel %vm1044_vm2, %v1345_v16, -inf }
 0x1c8   : > { %v2389_v19 = vpop.f32.mrf.mxu1 }
 0x1ca   : > { %1359 = vmax.xlane.f32.xlu1 %v1358_v18 }
 0x246   : > { %v1351_v20 = vpop.xlane.xlu0 %1350 }
 0x247   : > { %v1361_v21 = vsub.f32 %v1117_v8, %v1351_v20 }
 0x249   : > { %v1365_v22 = vmul.f32 1.442695, %v1361_v21 }
 0x24a   : > { %v1354_v23 = vpop.xlane.xlu0 %1353 }
 0x24b   : > { %2495 = vpow2.f32 %v1365_v22  ;;  %v1362_v24 = vsub.f32 %v1193_v9, %v1354_v23 }
 0x24d   : > { %v1367_v25 = vmul.f32 1.442695, %v1362_v24 }
 0x24f   : > { %2497 = vpow2.f32 %v1367_v25  ;;  %v1357_v27 = vpop.xlane.xlu1 %1356 }
 0x250   : > { %v1363_v28 = vsub.f32 %v1269_v14, %v1357_v27 }
 0x252   : > { %v1369_v29 = vmul.f32 1.442695, %v1363_v28 }
 0x253   : > { %v1360_v36 = vpop.xlane.xlu1 %1359 }
 0x254   : > { %2499 = vpow2.f32 %v1369_v29  ;;  %v1364_v37 = vsub.f32 %v1345_v16, %v1360_v36 }
 0x256   : > { %v1371_v39 = vmul.f32 1.442695, %v1364_v37 }
 0x258   : > { %v2496_v30 = vpop.eup %2495  ;;  %2501 = vpow2.f32 %v1371_v39 }
 0x259   : > { %v1373_v31 = vsel %vm1044_vm2, %v2496_v30, 0.0 }
 0x25a   : > { %1374 = vadd.xlane.f32.xlu0 %v1373_v31 }
 0x25c   : > { %v2498_v32 = vpop.eup %2497 }
 0x25d   : > { %v1376_v33 = vsel %vm1044_vm2, %v2498_v32, 0.0 }
 0x25e   : > { %1377 = vadd.xlane.f32.xlu1 %v1376_v33 }
 0x261   : > { %v2500_v34 = vpop.eup %2499 }
 0x262   : > { %v1379_v35 = vsel %vm1044_vm2, %v2500_v34, 0.0 }
 0x263   : > { %1380 = vadd.xlane.f32.xlu0 %v1379_v35 }
 0x265   : > { %v2502_v40 = vpop.eup %2501 }
 0x266   : > { %v1382_v42 = vsel %vm1044_vm2, %v2502_v40, 0.0 }
 0x26f   : > { %1473 = vrot.lane.b32.xlu1 %v2918_v41, %s2621_s18 }
 0x273   : > { %1549 = vrot.lane.b32.xlu1 %v640_v59, %s2621_s18  ;;  %v1703_v59 = vld [vmem:[%s3113_s6 + $0x10] sm:$0xff] }
 0x279   : > { %1397 = vrot.lane.b32.xlu0 %v2916_v38, %s2621_s18 }
 0x297   : > { %1383 = vadd.xlane.f32.xlu1 %v1382_v42 }
 0x2a8   : > { %1625 = vrot.lane.b32.xlu1 %v2938_v60, %s2621_s18  ;;  %s2515_s18 = sshll.u32 %s2622_s15, 4  ;;  %s2516_s18 = int_to_ptr.vmem [resolvable:$false] %s2515_s18 }
 0x2a9   : > { %p2518_p1 = scmp.lt.s32.totalorder %s3028_s25, %s2516_s18 }
 0x2e3   : > { %v1375_v43 = vpop.xlane.xlu0 %1374 }
 0x2e4   : > { %2503 = vrcp.f32 %v1375_v43 }
 0x2e7   : > { %v1378_v44 = vpop.xlane.xlu1 %1377 }
 0x2e8   : > { %2505 = vrcp.f32 %v1378_v44 }
 0x2eb   : > { %v1474_v45 = vpop.permute.xlu1 %1473 }
 0x2ec   : > { %v1381_v41 = vpop.xlane.xlu0 %1380  ;;  %2396 = vmatpush3.msra.mxu1 %v1474_v45 }
 0x2ed   : > { %2507 = vrcp.f32 %v1381_v41  ;;  %2405 = vmatprep.subr.mxu1 %v2619_v2 }
 0x2ef   : > { %v1550_v48 = vpop.permute.xlu1 %1549 }
 0x2f0   : > { %v1398_v38 = vpop.permute.xlu0 %1397 }
 0x2f1   : > { %v2504_v46 = vpop.eup %2503  ;;  %2391 = vmatpush3.msra.mxu0 %v1398_v38 }
 0x2f2   : > { %2400 = vmatprep.subr.mxu0 %v2619_v2  ;;  %v1389_v47 = vmul.f32 %v2504_v46, %v2496_v30 }
 0x2f4   : > { %2393 = vmatmul.mubr.msk.f32.vlgmr.msra.gmra.mxu0 %vm1044_vm2, %v1389_v47  ;;  %1393 = vst.msk [vmem:[%s2981_s20] sm:$0xff] %vm1044_vm2, %v1389_v47 }
 0x2f5   : > { %v2506_v49 = vpop.eup %2505  ;;  %2401 = vmatpush3.msra.mxu0 %v1550_v48  ;;  %2402 = vmatprep.mubr.msk.f32.mxu0 %vm2620_vm1, %v2619_v2 }
 0x2f6   : > { %v1390_v50 = vmul.f32 %v2506_v49, %v2498_v32  ;;  %2410 = vmatprep.subr.mxu0 %v2619_v2 }
 0x2f8   : > { %2398 = vmatmul.mubr.msk.f32.vlgmr.msra.gmra.mxu1 %vm1044_vm2, %v1390_v50  ;;  %1394 = vst.msk [vmem:[%s2981_s20 + $0x8] sm:$0xff] %vm1044_vm2, %v1390_v50 }
 0x2f9   : > { %2407 = vmatprep.mubr.msk.f32.mxu1 %vm2620_vm1, %v2619_v2 }
 0x2fa   : > { %v2508_v51 = vpop.eup %2507 }
 0x2fb   : > { %v1391_v52 = vmul.f32 %v2508_v51, %v2500_v34 }
 0x2fd   : > { %2403 = vmatmul.mubr.msk.f32.vlgmr.msra.gmra.mxu0 %vm1044_vm2, %v1391_v52  ;;  %1395 = vst.msk [vmem:[%s2981_s20 + $0x10] sm:$0xff] %vm1044_vm2, %v1391_v52 }
 0x2fe   : > { %2412 = vmatprep.mubr.msk.f32.mxu0 %vm2620_vm1, %v2619_v2  ;;  %2411 = vmatpush3.msra.mxu0 %v1701_v57 }
 0x2ff   : > { %2420 = vmatprep.subr.mxu0 %v2619_v2 }
 0x320   : > { %v1384_v53 = vpop.xlane.xlu1 %1383 }
 0x321   : > { %2509 = vrcp.f32 %v1384_v53 }
 0x324   : > { %v1626_v54 = vpop.permute.xlu1 %1625 }
 0x325   : > { %2406 = vmatpush3.msra.mxu1 %v1626_v54 }
 0x326   : > { %2415 = vmatprep.subr.mxu1 %v2619_v2 }
 0x32e   : > { %v2510_v55 = vpop.eup %2509 }
 0x32f   : > { %v1392_v56 = vmul.f32 %v2510_v55, %v2502_v40 }
 0x331   : > { %2408 = vmatmul.mubr.msk.f32.vlgmr.msra.gmra.mxu1 %vm1044_vm2, %v1392_v56  ;;  %1396 = vst.msk [vmem:[%s2981_s20 + $0x18] sm:$0xff] %vm1044_vm2, %v1392_v56  ;;  %s2517_s20 = scalar_lea.vmem %s2516_s18, 1024 }
 0x332   : > { %2417 = vmatprep.mubr.msk.f32.mxu1 %vm2620_vm1, %v2619_v2  ;;  %2416 = vmatpush3.msra.mxu1 %v1702_v58  ;;  %p2519_p2 = scmp.lt.s32.totalorder %s2517_s20, %s2511_s29 }
 0x333   : > { %2425 = vmatprep.subr.mxu1 %v2619_v2 }
 0x334   : > { %p2520_p3 = por %p2519_p2, %p2518_p1 }
 0x336   : > { %p2521_p5 = pnand %p2520_p3, %p2514_p0 }
 0x3b4   : > { %v1469_v60 = vpop.f32.mrf.mxu0 }
 0x3b5   : > { %2413 = vmatmul.mubr.msk.f32.vlgmr.msra.gmra.mxu0 %vm1044_vm2, %v1469_v60 }
 0x3b6   : > { %v2394_v61 = vpop.f32.mrf.mxu0  ;;  %2421 = vmatpush3.msra.mxu0 %v1703_v59  ;;  %2422 = vmatprep.mubr.msk.f32.mxu0 %vm2620_vm1, %v2619_v2 }
 0x3b8   : > { %v1545_v63 = vpop.f32.mrf.mxu1 }
 0x3b9   : > { %2418 = vmatmul.mubr.msk.f32.vlgmr.msra.gmra.mxu1 %vm1044_vm2, %v1545_v63 }
 0x3ba   : > { %v2399_v0 = vpop.f32.mrf.mxu1  ;;  %2426 = vmatpush3.msra.mxu1 %v1704_v62  ;;  %2427 = vmatprep.mubr.msk.f32.mxu1 %vm2620_vm1, %v2619_v2 }
 0x3bd   : > { %v1621_v1 = vpop.f32.mrf.mxu0 }
 0x3be   : > { %2423 = vmatmul.mubr.msk.f32.vlgmr.msra.gmra.mxu0 %vm1044_vm2, %v1621_v1 }
 0x3bf   : > { %v2404_v3 = vpop.f32.mrf.mxu0 }
 0x3f1   : > { %v1697_v4 = vpop.f32.mrf.mxu1 }
 0x3f2   : > { %2428 = vmatmul.mubr.msk.f32.vlgmr.msra.gmra.mxu1 %vm1044_vm2, %v1697_v4 }
 0x3f3   : > { %v2409_v5 = vpop.f32.mrf.mxu1 }
 0x3f4   : > { %2524 = shalt.err (!%p2521_p5)
}
 0x3f5   : > { %s2525_s23 = scalar_lea.hbm %s3033_s27, 512  ;;  %s2529_s15 = scalar_lea.hbm %s3116_s9, 1024 }
 0x3f6   : > { %p2526_p6 = scmp.ne.s32.totalorder %s3033_s27, %s2525_s23  ;;  %p2530_p10 = scmp.lt.s32.totalorder %s3033_s27, %s3116_s9 }
 0x3f7   : > { %p2531_p11 = scmp.lt.s32.totalorder %s2529_s15, %s2525_s23 }
 0x3f8   : > { %p2527_p7 = pnand %p2526_p6, %p2716_p4 }
 0x3f9   : > { %p2532_p12 = por %p2531_p11, %p2530_p10 }
 0x3fa   : > { %p2528_p9 = pneg %p2527_p7 }
 0x3fc   : > { %p2533_p13 = pnand %p2532_p12, %p2528_p9 }
 0x3fe   : > { %2536 = shalt.err (!%p2533_p13)
}
 0x3ff   : > { %s2623_s29 = smov 128   ;;  %s2624_s18 = smov 8   ;;  %v2209_v18 = vld [vmem:[%s3114_s7] ss:$0 sm:$0xff] }
 0x400   : > { %s3121_s20 = scalar_lea.sflag [#allocation5], %s2975_s16  ;;  %s2173_s0 = sshll.u32 %s2975_s16, 3 }
 0x401   : > { %2431 = dma.vmem_to_hbm [thread:$0]  (%p2716_p4), %s3028_s25, 512, %s3033_s27, %s3121_s20, %s2623_s29, %s2623_s29, %s2624_s18  }
 0x402   : > { %s2212_s28 = sshll.u32 %s2609_s12, 7  ;;  %s364_s23 = scalar_lea.vmem [#allocation2], %s2173_s0 }
 0x403   : > { %s2034_s24 = sshll.u32 %s364_s23, 4  ;;  %s2032_s29 = scalar_lea.hbm %s3115_s8, %s2212_s28  ;;  %s2035_s24 = int_to_ptr.vmem [resolvable:$true] %s2034_s24 }
 0x404   : > { %s2015_s18 = scalar_lea.sflag [#allocation3], %s2975_s16  ;;  %s2537_s20 = scalar_lea.vmem %s2035_s24, 128 }
 0x405   : > { %p2538_p0 = scmp.ne.s32.totalorder %s2035_s24, %s2537_s20  ;;  %s2625_s25 = smov [#allocation2]  }
 0x406   : > { %s2541_s12 = sshll.u32 %s2625_s25, 4  ;;  %s2542_s12 = int_to_ptr.vmem [resolvable:$false] %s2541_s12 }
 0x407   : > { %p2539_p1 = pnand %p2538_p0, %p2716_p4  ;;  %s2543_s0 = scalar_lea.vmem %s2542_s12, 256 }
 0x408   : > { %p2544_p3 = scmp.lt.s32.totalorder %s2035_s24, %s2542_s12  ;;  %p2545_p5 = scmp.lt.s32.totalorder %s2543_s0, %s2537_s20 }
 0x409   : > { %p2540_p2 = pneg %p2539_p1 }
 0x40a   : > { %p2546_p6 = por %p2545_p5, %p2544_p3 }
 0x40c   : > { %p2547_p7 = pnand %p2546_p6, %p2540_p2 }
 0x475   : > { %v1774_v2 = vpop.f32.mrf.mxu0 }
 0x476   : > { %v1997_v12 = vsel %vm429_vm0, %v1774_v2, 0.0 }
 0x477   : > { %v2414_v6 = vpop.f32.mrf.mxu0 }
 0x479   : > { %v1847_v7 = vpop.f32.mrf.mxu1 }
 0x47a   : > { %v1998_v11 = vsel %vm429_vm0, %v1847_v7, 0.0 }
 0x47b   : > { %v2419_v8 = vpop.f32.mrf.mxu1  ;;  %v1999_v14 = vadd.f32 %v1998_v11, %v1997_v12 }
 0x47e   : > { %v1920_v9 = vpop.f32.mrf.mxu0 }
 0x47f   : > { %v2000_v13 = vsel %vm429_vm0, %v1920_v9, 0.0 }
 0x480   : > { %v2424_v10 = vpop.f32.mrf.mxu0  ;;  %v2001_v15 = vadd.f32 %v2000_v13, %v1999_v14 }
 0x4b2   : > { %v1993_v16 = vpop.f32.mrf.mxu1 }
 0x4b3   : > { %v2002_v17 = vsel %vm429_vm0, %v1993_v16, 0.0 }
 0x4b4   : > { %v2003_v19 = vadd.f32 %v2002_v17, %v2001_v15  ;;  %v2429_v20 = vpop.f32.mrf.mxu1 }
 0x4b6   : > { %v2011_v21 = vadd.f32 %v2209_v18, %v2003_v19 }
 0x4b8   : > { %v2012_v22 = vadd.f32 %v2011_v21, %v2854_v26 }
 0x4ba   : > { %2013 = vst.msk [vmem:[%s364_s23] sm:$0xff] %vm429_vm0, %v2012_v22 }
 0x4bb   : > { %2550 = shalt.err (!%p2547_p7)
}
 0x4bc   : > { %s2551_s27 = scalar_lea.hbm %s2032_s29, 128  ;;  %s2555_s23 = scalar_lea.hbm %s3115_s8, 256 }
 0x4bd   : > { %p2552_p9 = scmp.ne.s32.totalorder %s2032_s29, %s2551_s27  ;;  %p2556_p12 = scmp.lt.s32.totalorder %s2032_s29, %s3115_s8 }
 0x4be   : > { %p2557_p13 = scmp.lt.s32.totalorder %s2555_s23, %s2551_s27 }
 0x4bf   : > { %p2553_p10 = pnand %p2552_p9, %p2716_p4 }
 0x4c0   : > { %p2558_p0 = por %p2557_p13, %p2556_p12 }
 0x4c1   : > { %p2554_p11 = pneg %p2553_p10 }
 0x4c3   : > { %p2559_p1 = pnand %p2558_p0, %p2554_p11 }
 0x4c5   : > { %2562 = shalt.err (!%p2559_p1)
}
 0x4c6   : > { %2430 = dma.vmem_to_hbm [thread:$0]  (%p2716_p4), %s2035_s24, 128, %s2032_s29, %s2015_s18  }
 0x4c7 PF: > { %p2441_p2 = scmp.ge.s32.totalorder %s2617_s14, 2  ;;  %s2063_s20 = sand.u32 1, %s2597_s30  }
 0x4c8   : > { %s2064_s25 = scalar_lea.sflag [#allocation3], %s2063_s20 }
 0x4c9   : > { %p2435_p3 = pnand %p2441_p2, %p2723_p8 }
 0x4cb   : > { %p2436_p5 = pneg %p2435_p3 }
 0x4cd   : > { %2588 = dma.done.wait (%p2436_p5), %s2064_s25, 128  }
 0x4ce   : > { %2590 = vsyncadd (%p2436_p5), %s2064_s25, 4294967168  ;;  %s2073_s12 = scalar_lea.sflag [#allocation5], %s2063_s20 }
 0x4cf   : > { %2592 = dma.done.wait (%p2436_p5), %s2073_s12, 512  }
 0x4d0   : > { %2594 = vsyncadd (%p2436_p5), %s2073_s12, 4294966784  ;;  %s26_s14 = sadd.s32 1, %s2617_s14   ;;  %s3122_s30 = smov %s2601_s10 }
 0x4d1   : > { %p23_p6 = scmp.ge.s32.totalorder %s26_s14, 4   ;;  %s3123_s10 = smov %s2605_s11 }
 0x4d2   : > { %s3124_s11 = smov %s2729_s22  ;;  %s3125_s12 = smov %s2613_s13 }
 0x4d3   : > { %s3126_s13 = smov %s3128_s17  ;;  %25 = sbr.rel (!%p23_p6) target bundleno = 8 (0x8), region = 107 }
 0x4d8   :  { %2078 = vsyncpa [#allocation3], 1 }
 0x4d9   :  { %2080 = vsyncpa [#allocation3 + $0x1], 1 }
 0x4da   :  { %2081 = vsyncpa [#allocation5], 1 }
 0x4db   :  { %2083 = vsyncpa [#allocation5 + $0x1], 1 }

</bundles_post_ra>
